<compile_context>
chip_gen: v7x
topology: tpu7x:2x2x1
jax: 0.10.0
libtpu: 0.0.40
codegen_flags: <defaults>
</compile_context>

<pallas_src>
import jax
import jax.numpy as jnp
from jax.experimental import pallas as pl
from jax.experimental.pallas import tpu as pltpu

NEG_SLOPE = 0.2   # GATConv LeakyReLU default negative slope
GIN_EPS = 0.0     # GINConv default eps
LANE = 128


def _mxu(a, b):
    # bf16 operands, f32 accumulation on the MXU.
    return jnp.dot(a.astype(jnp.bfloat16), b.astype(jnp.bfloat16),
                   preferred_element_type=jnp.float32)


# --------------------------- kernels ---------------------------------------

def _linear_kernel(x_ref, w_ref, o_ref):
    # Row block of X @ W (no bias / activation).
    o_ref[...] = _mxu(x_ref[...], w_ref[...]).astype(o_ref.dtype)


def _gcn_agg_kernel(a_ref, xw_ref, b_ref, o_ref):
    # h1[i_block] = relu(A_norm[i_block, :] @ (X W) + b)
    h = _mxu(a_ref[...], xw_ref[...]) + b_ref[...]
    o_ref[...] = jnp.maximum(h, 0.0).astype(o_ref.dtype)


def _gat_lin_kernel(h_ref, w_ref, att_ref, hg_ref, asd_ref):
    # hg = h @ W_gat ; per-node attention terms a_src.hg and a_dst.hg (f32).
    hg = _mxu(h_ref[...], w_ref[...])                       # (TM, Hp) f32
    att = att_ref[...]                                      # (2, Hp) f32
    a_s = jnp.sum(hg * att[0:1, :], axis=1, keepdims=True)  # (TM, 1)
    a_d = jnp.sum(hg * att[1:2, :], axis=1, keepdims=True)  # (TM, 1)
    hg_ref[...] = hg.astype(hg_ref.dtype)
    asd_ref[:, 0:1] = a_s
    asd_ref[:, 1:2] = a_d


def _gat_agg_kernel(a_ref, asd_ref, asrow_ref, hg_ref, b_ref, o_ref):
    # Masked softmax over in-neighbours (+ self) for a block of destination rows.
    support = a_ref[...] > 0.0                              # (TM, N) bool
    a_d = asd_ref[...][:, 1:2]                              # (TM, 1)
    logits = a_d + asrow_ref[...]                           # (TM, N): msg j -> i
    # Fused LeakyReLU + mask; -1e30 fill precedes the row max so m is never
    # taken from a masked column; exp(-1e30 - m) underflows to 0.
    logits = jnp.where(support, jnp.maximum(logits, NEG_SLOPE * logits), -1e30)
    m = jnp.max(logits, axis=1, keepdims=True)
    p = jnp.exp(logits - m)
    inv_l = pl.reciprocal(jnp.sum(p, axis=1, keepdims=True), approx=True)  # EUP
    alpha = p * inv_l
    h = _mxu(alpha, hg_ref[...]) + b_ref[...]
    o_ref[...] = jnp.maximum(h, 0.0).astype(o_ref.dtype)


def _gin_fc_kernel(a_ref, h_ref, hrow_ref, w1_ref, b1_ref, w2_ref, b2_ref,
                   wfc_ref, s_ref):
    # GIN: a_nbr@h + (1+eps)h == support@h + eps*h  (no iota / diag mask needed)
    support = (a_ref[...] > 0.0).astype(jnp.bfloat16)       # (TM, N)
    agg = _mxu(support, h_ref[...])                         # (TM, Hp) f32
    if GIN_EPS != 0.0:
        agg = agg + GIN_EPS * hrow_ref[...].astype(jnp.float32)
    z = jnp.maximum(_mxu(agg, w1_ref[...]) + b1_ref[...], 0.0)
    h3 = jnp.maximum(_mxu(z, w2_ref[...]) + b2_ref[...], 0.0)
    # Per-node src/dst halves of the edge score, padded to a lane-dense
    # (TM, 128) slab (cols 0/1 real, rest zero) -> single unmasked store.
    s_ref[...] = _mxu(h3, wfc_ref[...])


# --------------------------- wrapper ----------------------------------------

def _round_up(v, m):
    return ((v + m - 1) // m) * m


def _pad2(a, rows, cols, dtype):
    out = jnp.zeros((rows, cols), dtype)
    return out.at[:a.shape[0], :a.shape[1]].set(a.astype(dtype))


def _vmem_limit_bytes(n, tm, hp):
    # Generation-aware cap: physical VMEM minus headroom for compiler scratch.
    try:
        cap = int(getattr(pltpu.get_tpu_info(), "vmem_capacity_bytes", 64 * 2**20))
    except Exception:
        cap = 64 * 2**20
    usable = max(cap - 16 * 2**20, 32 * 2**20)
    est = (2 * (tm * n * 2)        # double-buffered bf16 adjacency row block
           + 2 * (n * hp * 2)      # full bf16 node-feature operand(s)
           + 3 * (tm * n * 4)      # f32 logits / p / alpha temporaries
           + 4 * (hp * hp * 2)     # weight tiles
           + 8 * (tm * hp * 4))    # activations / accumulators
    return int(min(usable, max(16 * 2**20, 2 * est)))


def init_params(key, input_size, hidden_size):
    ks = jax.random.split(key, 8)

    def lin(k, fan_in, shape):
        return jax.random.normal(k, shape, jnp.float32) / jnp.sqrt(float(fan_in))

    return dict(
        w_gcn=lin(ks[0], input_size, (input_size, hidden_size)),
        b_gcn=jnp.zeros((1, hidden_size), jnp.float32),
        w_gat=lin(ks[1], hidden_size, (hidden_size, hidden_size)),
        att_src=lin(ks[2], hidden_size, (1, hidden_size)),
        att_dst=lin(ks[3], hidden_size, (1, hidden_size)),
        b_gat=jnp.zeros((1, hidden_size), jnp.float32),
        w1=lin(ks[4], hidden_size, (hidden_size, hidden_size)),
        b1=jnp.zeros((1, hidden_size), jnp.float32),
        w2=lin(ks[5], hidden_size, (hidden_size, hidden_size)),
        b2=jnp.zeros((1, hidden_size), jnp.float32),
        w_fc=lin(ks[6], 2 * hidden_size, (2 * hidden_size, 1)),
        b_fc=jnp.zeros((1, 1), jnp.float32),
    )


def sequential_stacking_forward(x, edge_index, params):
    """x: (N, F) float32 node features, edge_index: (2, E) int32 [src; dst]."""
    N, F = x.shape
    H = params["w_gcn"].shape[1]
    Fp = _round_up(F, LANE)
    Hp = _round_up(H, LANE)
    src, dst = edge_index[0], edge_index[1]

    bf16, f32 = jnp.bfloat16, jnp.float32

    # Dense adjacency A[i, j] = 1 iff there is an edge j -> i (message j to i);
    # GCN sym-normalized (A + I) is the only O(N^2) operand, kept in bf16.
    A = jnp.zeros((N, N), f32).at[dst, src].set(1.0)
    A_hat = A + jnp.eye(N, dtype=f32)
    deg = jnp.sum(A_hat, axis=1)
    d_is = jax.lax.rsqrt(jnp.maximum(deg, 1e-12))
    a_gcn = (A_hat * d_is[:, None] * d_is[None, :]).astype(bf16)

    # Zero-pad features / weights so all MXU dims are multiples of 128.
    x_p   = _pad2(x, N, Fp, bf16)
    w_gcn = _pad2(params["w_gcn"], Fp, Hp, bf16)
    b_gcn = _pad2(params["b_gcn"], 1, Hp, f32)
    w_gat = _pad2(params["w_gat"], Hp, Hp, bf16)
    att   = _pad2(jnp.concatenate([params["att_src"], params["att_dst"]], axis=0),
                  2, Hp, f32)
    b_gat = _pad2(params["b_gat"], 1, Hp, f32)
    w1    = _pad2(params["w1"], Hp, Hp, bf16)
    b1    = _pad2(params["b1"], 1, Hp, f32)
    w2    = _pad2(params["w2"], Hp, Hp, bf16)
    b2    = _pad2(params["b2"], 1, Hp, f32)
    # Final edge FC split into per-node src/dst halves, lane-padded to 128 cols.
    w_fc_pair = jnp.stack([params["w_fc"][:H, 0], params["w_fc"][H:, 0]], axis=1)
    w_fc_blk  = _pad2(w_fc_pair, Hp, LANE, bf16)

    TM = LANE if (N % LANE == 0) else N
    grid = (N // TM,)

    def row(last):
        return pl.BlockSpec((TM, last), lambda i: (i, 0))

    def full(r, c):
        return pl.BlockSpec((r, c), lambda i: (0, 0))

    cp = pltpu.CompilerParams(
        dimension_semantics=("parallel",),
        vmem_limit_bytes=_vmem_limit_bytes(N, TM, Hp))

    # 1) GCN feature transform: xw = X @ W_gcn
    xw = pl.pallas_call(
        _linear_kernel, grid=grid,
        in_specs=[row(Fp), full(Fp, Hp)],
        out_specs=row(Hp),
        out_shape=jax.ShapeDtypeStruct((N, Hp), bf16),
        compiler_params=cp,
    )(x_p, w_gcn)

    # 2) GCN aggregation: h1 = relu(A_norm @ xw + b)   (dropout = identity)
    h1 = pl.pallas_call(
        _gcn_agg_kernel, grid=grid,
        in_specs=[row(N), full(N, Hp), full(1, Hp)],
        out_specs=row(Hp),
        out_shape=jax.ShapeDtypeStruct((N, Hp), bf16),
        compiler_params=cp,
    )(a_gcn, xw, b_gcn)

    # 3) GAT linear + per-node attention terms (a_src.hg, a_dst.hg)
    hg, asd = pl.pallas_call(
        _gat_lin_kernel, grid=grid,
        in_specs=[row(Hp), full(Hp, Hp), full(2, Hp)],
        out_specs=(row(Hp), pl.BlockSpec((TM, 2), lambda i: (i, 0))),
        out_shape=(jax.ShapeDtypeStruct((N, Hp), bf16),
                   jax.ShapeDtypeStruct((N, 2), f32)),
        compiler_params=cp,
    )(h1, w_gat, att)

    a_s_row = asd[:, 0][None, :]          # (1, N) source terms, lane-major

    # 4) GAT aggregation (masked softmax over in-neighbours + self)
    h2 = pl.pallas_call(
        _gat_agg_kernel, grid=grid,
        in_specs=[row(N), pl.BlockSpec((TM, 2), lambda i: (i, 0)),
                  full(1, N), full(N, Hp), full(1, Hp)],
        out_specs=row(Hp),
        out_shape=jax.ShapeDtypeStruct((N, Hp), bf16),
        compiler_params=cp,
    )(a_gcn, asd, a_s_row, hg, b_gat)

    # 5) GIN (MLP on support@h) + per-node halves of the edge score
    s = pl.pallas_call(
        _gin_fc_kernel, grid=grid,
        in_specs=[row(N), full(N, Hp), row(Hp), full(Hp, Hp), full(1, Hp),
                  full(Hp, Hp), full(1, Hp), full(Hp, LANE)],
        out_specs=row(LANE),
        out_shape=jax.ShapeDtypeStruct((N, LANE), f32),
        compiler_params=cp,
    )(a_gcn, h2, h2, w1, b1, w2, b2, w_fc_blk)

    # Per-edge gather of the two per-node score halves (O(E), done in XLA).
    scores = jnp.take(s[:, 0], src) + jnp.take(s[:, 1], dst) + params["b_fc"][0, 0]
    return scores[:, None]                                   # (E, 1)


if __name__ == "__main__":
    key = jax.random.PRNGKey(0)
    N = 8
    input_size = hidden_size = 32   # stacking requires input_size == hidden_size

    # Deterministic small graph: directed ring in both directions -> 16 edges.
    fwd = [(i, (i + 1) % N) for i in range(N)]
    bwd = [((i + 1) % N, i) for i in range(N)]
    edges = fwd + bwd
    src = jnp.array([e[0] for e in edges], dtype=jnp.int32)
    dst = jnp.array([e[1] for e in edges], dtype=jnp.int32)
    edge_index = jnp.stack([src, dst], axis=0)

    kx, kp = jax.random.split(key)
    x = jax.random.normal(kx, (N, input_size), jnp.float32)
    params = init_params(kp, input_size, hidden_size)

    out = sequential_stacking_forward(x, edge_index, params)
    out = jax.block_until_ready(out)
    assert out.shape == (edge_index.shape[1], 1)
    assert bool(jnp.all(jnp.isfinite(out)))
    print("KERNEL_OK")
</pallas_src>

<mosaic_0001>
module attributes {stable_mosaic.version = 11 : i64} {
  func.func @_linear_kernel(%arg0: i32, %arg1: memref<8x128xbf16, #tpu.memory_space<vmem>>, %arg2: memref<128x128xbf16, #tpu.memory_space<vmem>>, %arg3: memref<8x128xbf16, #tpu.memory_space<vmem>>) attributes {dimension_semantics = [#tpu.dimension_semantics<parallel>], iteration_bounds = array<i64: 1>, scalar_prefetch = 0 : i64, scratch_operands = 0 : i64, tpu.core_type = #tpu.core_type<tc>, window_params = [{transform_indices = @transform_0, window_bounds = array<i64: 8, 128>}, {pipeline_mode = #tpu.pipeline_mode<synchronous>, transform_indices = @transform_1, window_bounds = array<i64: 128, 128>}, {transform_indices = @transform_2, window_bounds = array<i64: 8, 128>}]} {
    %c0 = arith.constant 0 : index
    %c0_0 = arith.constant 0 : index
    %0 = vector.load %arg1[%c0, %c0_0] : memref<8x128xbf16, #tpu.memory_space<vmem>>, vector<8x128xbf16>
    %c0_1 = arith.constant 0 : index
    %c0_2 = arith.constant 0 : index
    %1 = vector.load %arg2[%c0_1, %c0_2] : memref<128x128xbf16, #tpu.memory_space<vmem>>, vector<128x128xbf16>
    %cst = arith.constant dense<0.000000e+00> : vector<8x128xf32>
    %2 = tpu.matmul %0, %1, %cst {dimension_numbers = #tpu.dot_dimension_numbers<[1], [0], [0], [1], [0, 0, 1, 1], [], []>} : vector<8x128xbf16>, vector<128x128xbf16>, vector<8x128xf32> -> vector<8x128xf32>
    %3 = arith.truncf %2 : vector<8x128xf32> to vector<8x128xbf16>
    %c0_3 = arith.constant 0 : index
    %c0_4 = arith.constant 0 : index
    %4 = vector.load %arg3[%c0_3, %c0_4] : memref<8x128xbf16, #tpu.memory_space<vmem>>, vector<8x128xbf16>
    tpu.vector_store %arg3[%c0_3, %c0_4], %3 {strides = array<i32>} : memref<8x128xbf16, #tpu.memory_space<vmem>>, vector<8x128xbf16>,
    return
  }
  func.func @transform_0(%arg0: i32) -> (i32, i32) {
    %c0_i32 = arith.constant 0 : i32
    %c0_i32_0 = arith.constant 0 : i32
    return %arg0, %c0_i32 : i32, i32
  }
  func.func @transform_1(%arg0: i32) -> (i32, i32) {
    %c0_i32 = arith.constant 0 : i32
    %c0_i32_0 = arith.constant 0 : i32
    %c0_i32_1 = arith.constant 0 : i32
    return %c0_i32, %c0_i32_0 : i32, i32
  }
  func.func @transform_2(%arg0: i32) -> (i32, i32) {
    %c0_i32 = arith.constant 0 : i32
    %c0_i32_0 = arith.constant 0 : i32
    return %arg0, %c0_i32 : i32, i32
  }
}

</mosaic_0001>

<bundles_post_ra>
// kernel: tpu_custom_call.1
= control target key start
LH: loop header
LB: loop body
LE: loop exit
PB: predicated region body
PF: predicated region fallthrough
CT: control target
= control target key end

     0   :  { %7 = vsyncpa [#allocation3], 0  ;;  %s351_s0 = inlined_call_operand.hbm [shape: bf16[8,128], index: 0, kind: input, shape index: {}]   ;;  %s352_s1 = inlined_call_operand.hbm [shape: bf16[128,128], index: 1, kind: input, shape index: {}]   ;;  %s353_s2 = inlined_call_operand.hbm [shape: bf16[8,128], index: 2, kind: output, shape index: {}]  }
   0x1   :  { %8 = vsyncpa [#allocation6], 0 }
   0x2   :  { %9 = vsyncpa [#allocation4], 0  ;;  %s286_s9 = smov [#allocation2]   ;;  %s287_s11 = smov [#allocation5]  }
   0x3   :  { %s16_s10 = sshll.u32 %s286_s9, 4  ;;  %s25_s12 = sshll.u32 %s287_s11, 4  ;;  %s17_s10 = int_to_ptr.vmem [resolvable:$true] %s16_s10  ;;  %s308_s12 = int_to_ptr.vmem [resolvable:$true] %s25_s12 }
   0x4   :  { %s214_s15 = scalar_lea.hbm %s351_s0, 64 }
   0x5   :  { %p215_p0 = scmp.ne.s32.totalorder %s351_s0, %s214_s15  ;;  %p218_p1 = scmp.lt.u32.totalorder %s214_s15, %s351_s0 }
   0x7   :  { %p220_p2 = pnand %p218_p1, %p215_p0 }
   0x9   :  { %223 = shalt.err (!%p220_p2)
}
   0xa   :  { %s224_s20 = scalar_lea.vmem %s17_s10, 64  ;;  %p229_p4 = scmp.lt.s32.totalorder %s17_s10, %s17_s10 }
   0xb   :  { %p225_p3 = scmp.ne.s32.totalorder %s17_s10, %s224_s20  ;;  %p230_p5 = scmp.lt.s32.totalorder %s224_s20, %s224_s20 }
   0xd   :  { %p231_p6 = por %p230_p5, %p229_p4 }
   0xf   :  { %p232_p7 = pnand %p231_p6, %p225_p3 }
  0x11   :  { %235 = shalt.err (!%p232_p7)
}
  0x12   :  { %19 = dma.hbm_to_vmem [thread:$0]  %s351_s0, 64, %s17_s10, [#allocation3]  }
  0x13   :  { %s236_s25 = scalar_lea.hbm %s352_s1, 1024 }
  0x14   :  { %p237_p8 = scmp.ne.s32.totalorder %s352_s1, %s236_s25  ;;  %p240_p9 = scmp.lt.u32.totalorder %s236_s25, %s352_s1 }
  0x16   :  { %p242_p10 = pnand %p240_p9, %p237_p8 }
  0x18   :  { %245 = shalt.err (!%p242_p10)
}
  0x19   :  { %s246_s30 = scalar_lea.vmem %s308_s12, 1024  ;;  %p251_p12 = scmp.lt.s32.totalorder %s308_s12, %s308_s12 }
  0x1a   :  { %p247_p11 = scmp.ne.s32.totalorder %s308_s12, %s246_s30  ;;  %p252_p13 = scmp.lt.s32.totalorder %s246_s30, %s246_s30 }
  0x1c   :  { %p253_p0 = por %p252_p13, %p251_p12 }
  0x1e   :  { %p254_p1 = pnand %p253_p0, %p247_p11 }
  0x20   :  { %257 = shalt.err (!%p254_p1)
}
  0x21   :  { %s288_s0 = smov 64   ;;  %s289_s3 = smov 4  }
  0x22   :  { %31 = dma.hbm_to_vmem [thread:$0]  %s352_s1, 1024, %s308_s12, [#allocation6], %s288_s0, %s288_s0, %s289_s3  }
  0x23   :  { %280 = dma.done.wait [#allocation3], 64  }
  0x24   :  { %281 = vsyncadd [#allocation3], 4294967232 }
  0x25   :  { %282 = dma.done.wait [#allocation6], 1024  }
  0x26   :  { %283 = vsyncadd [#allocation6], 4294966272  ;;  %v290_v0 = vmov 0.0   ;;  %vm291_vm0 = vmmov 0   ;;  %v206_v1 = vld [vmem:[#allocation5] sm:$0xff]   ;;  %v207_v2 = vld [vmem:[#allocation5 + $0x8] sm:$0xff]  }
  0x27   :  { %179 = vmatprep.subr.bf16.mxu0 %v290_v0  ;;  %195 = vmatprep.mubr.msk.bf16.mxu0 %vm291_vm0, %v290_v0  ;;  %v208_v3 = vld [vmem:[#allocation5 + $0x10] sm:$0xff]   ;;  %v209_v4 = vld [vmem:[#allocation5 + $0x18] sm:$0xff]   ;;  %v210_v5 = vld [vmem:[#allocation5 + $0x20] sm:$0xff]   ;;  %s292_s1 = smov [#allocation7]  }
  0x28   :  { %180 = vmatpush3.bf16.msra.mxu0 %v206_v1  ;;  %v211_v6 = vld [vmem:[#allocation5 + $0x28] sm:$0xff]   ;;  %v212_v7 = vld [vmem:[#allocation5 + $0x30] sm:$0xff]   ;;  %v213_v8 = vld [vmem:[#allocation5 + $0x38] sm:$0xff]   ;;  %s152_s6 = sshll.u32 %s292_s1, 4  ;;  %s153_s6 = int_to_ptr.vmem [resolvable:$true] %s152_s6 }
  0x29   :  { %181 = vmatprep.subr.bf16.mxu0 %v290_v0  ;;  %v39_v9 = vld [vmem:[#allocation2] sm:$0xf]  ;;  %s258_s7 = scalar_lea.vmem %s153_s6, 64  ;;  %p263_p3 = scmp.lt.s32.totalorder %s153_s6, %s153_s6 }
  0x2a   :  { %p259_p2 = scmp.ne.s32.totalorder %s153_s6, %s258_s7  ;;  %p264_p4 = scmp.lt.s32.totalorder %s258_s7, %s258_s7 }
  0x2c   :  { %182 = vmatpush3.bf16.msra.mxu0 %v207_v2  ;;  %p265_p5 = por %p264_p4, %p263_p3 }
  0x2d   :  { %183 = vmatprep.subr.bf16.mxu0 %v290_v0 }
  0x2e   :  { %p266_p6 = pnand %p265_p5, %p259_p2 }
  0x30   :  { %184 = vmatpush3.bf16.msra.mxu0 %v208_v3 }
  0x31   :  { %185 = vmatprep.subr.bf16.mxu0 %v290_v0 }
  0x34   :  { %186 = vmatpush3.bf16.msra.mxu0 %v209_v4 }
  0x35   :  { %187 = vmatprep.subr.bf16.mxu0 %v290_v0 }
  0x38   :  { %188 = vmatpush3.bf16.msra.mxu0 %v210_v5 }
  0x39   :  { %189 = vmatprep.subr.bf16.mxu0 %v290_v0 }
  0x3c   :  { %190 = vmatpush3.bf16.msra.mxu0 %v211_v6 }
  0x3d   :  { %191 = vmatprep.subr.bf16.mxu0 %v290_v0 }
  0x40   :  { %192 = vmatpush3.bf16.msra.mxu0 %v212_v7 }
  0x41   :  { %193 = vmatprep.subr.bf16.mxu0 %v290_v0 }
  0x44   :  { %194 = vmatpush3.bf16.msra.mxu0 %v213_v8 }
  0x47   :  { %196 = vmatmul.mubr.bf16.vlgmr.msra.gmra.mrb[0].mxu0 %v39_v9 }
 0x11a   :  { %v138_v10 = vpop.f32.mrb[0].mxu0 }
 0x11b   :  { %v144_v11 = vpack.c.bf16 %v138_v10, %v138_v10  ;;  %v197_v12 = vpop.f32.mrb[1].mxu0 }
 0x11c   :  { %v141_v13 = vpop.f32.mrb[2].mxu0 }
 0x11d   :  { %145 = vst [vmem:[#allocation7] sm:$0xf] %v144_v11  ;;  %v198_v14 = vpop.f32.mrb[3].mxu0 }
 0x11e   :  { %269 = shalt.err (!%p266_p6)
}
 0x11f   :  { %s270_s10 = scalar_lea.hbm %s353_s2, 64 }
 0x120   :  { %p271_p7 = scmp.ne.s32.totalorder %s353_s2, %s270_s10  ;;  %p274_p8 = scmp.lt.u32.totalorder %s270_s10, %s353_s2 }
 0x122   :  { %p276_p9 = pnand %p274_p8, %p271_p7 }
 0x124   :  { %279 = shalt.err (!%p276_p9)
}
 0x125   :  { %155 = dma.vmem_to_hbm [thread:$0]  %s153_s6, 64, %s353_s2, [#allocation4]  }
 0x126   :  { %284 = dma.done.wait [#allocation4], 64  }
 0x127   :  { %285 = vsyncadd [#allocation4], 4294967232 }
 0x128   :  { %159 = vsyncpa [#allocation3], 1 }
 0x129   :  { %160 = vsyncpa [#allocation6], 1 }
 0x12a   :  { %161 = vsyncpa [#allocation4], 1 }

</bundles_post_ra>
